<compile_context>
chip_gen: v7x
topology: tpu7x:2x2x1
jax: 0.10.0
libtpu: 0.0.40
codegen_flags: <defaults>
</compile_context>

<pallas_src>
import functools
import math

import jax
import jax.numpy as jnp
from jax.experimental import pallas as pl
from jax.experimental.pallas import tpu as pltpu

# --- constants matching torchrl's "biased_softplus_1.0" mapping -------------
_MIN_VAL = 0.1                                       # torchrl biased_softplus default min_val
_SOFTPLUS_BIAS = math.log(math.exp(1.0 - _MIN_VAL) - 1.0)   # so fn(0.0) == 1.0
_SCALE_LB = 1e-4                                     # NormalParamWrapper scale_lb


def _round_up(v, m):
    return (v + m - 1) // m * m


def _pick_tile(limit, size, mult):
    """Largest multiple of `mult` that is <= limit and divides `size`.

    `size` is itself a multiple of `mult`, so `mult` is always a valid answer."""
    t = max(mult, (min(limit, size) // mult) * mult)
    while size % t:
        t -= mult
    return t


def _biased_softplus(z):
    """Numerically stable softplus(z + b0) + min_val, clamped at scale_lb."""
    z = z + _SOFTPLUS_BIAS
    sp = jnp.maximum(z, 0.0) + jnp.log1p(jnp.exp(-jnp.abs(z))) + _MIN_VAL
    return jnp.maximum(sp, _SCALE_LB)


# --------------------------- kernels -----------------------------------------
def _kernel_multi_k(x_ref, wl_ref, ws_ref, bl_ref, bs_ref,
                    loc_ref, scale_ref, acc_l, acc_s, *, n_k):
    """K-reduction path: f32 VMEM accumulators, init/finalize on the K axis.

    x_ref   : (tm, tk) bf16/f32 activation tile
    wl_ref  : (tk, tn) loc-half weight tile
    ws_ref  : (tk, tn) scale-half weight tile
    bl_ref  : (1, tn)  loc bias        bs_ref : (1, tn) scale bias
    loc_ref, scale_ref : (tm, tn) lane-dense outputs
    acc_l, acc_s       : (tm, tn) f32 accumulators (resident across K steps)
    """
    # Grid ids read ONCE at top level; pl.when bodies must not call program_id.
    k = pl.program_id(2)
    is_first = k == 0
    is_last = k == n_k - 1

    @pl.when(is_first)
    def _():
        acc_l[...] = jnp.zeros_like(acc_l)
        acc_s[...] = jnp.zeros_like(acc_s)

    x = x_ref[...]
    acc_l[...] += jnp.dot(x, wl_ref[...], preferred_element_type=jnp.float32)
    acc_s[...] += jnp.dot(x, ws_ref[...], preferred_element_type=jnp.float32)

    @pl.when(is_last)
    def _():
        loc_ref[...] = (acc_l[...] + bl_ref[...]).astype(loc_ref.dtype)
        scale_ref[...] = _biased_softplus(
            acc_s[...] + bs_ref[...]).astype(scale_ref.dtype)


def _kernel_single_k(x_ref, wl_ref, ws_ref, bl_ref, bs_ref, loc_ref, scale_ref):
    """Fast path when the whole K dimension fits one tile: no scratch, no when."""
    x = x_ref[...]
    loc = jnp.dot(x, wl_ref[...], preferred_element_type=jnp.float32) + bl_ref[...]
    pre = jnp.dot(x, ws_ref[...], preferred_element_type=jnp.float32) + bs_ref[...]
    loc_ref[...] = loc.astype(loc_ref.dtype)
    scale_ref[...] = _biased_softplus(pre).astype(scale_ref.dtype)


# --------------------------- host-side API ------------------------------------
def prepare_params(weight, bias, *, param_dtype=jnp.bfloat16, lane_multiple=128):
    """One-time prep of nn.Linear(Din, 2*D) params (outside the hot path).

    Splits the fused (2D, Din) weight into loc/scale halves, transposes to
    (Din, D), zero-pads Din and D to `lane_multiple`, casts the streamed weight
    to `param_dtype` (bf16 halves the dominant HBM traffic and runs the MXU at
    native rate).  Biases stay f32 (added in the f32 epilogue).
    """
    w = jnp.asarray(weight)
    b = jnp.asarray(bias)
    N, Din = w.shape
    assert N % 2 == 0, "operator output must be chunkable in 2 along last dim"
    D = N // 2
    Kp = _round_up(Din, lane_multiple)
    Dp = _round_up(D, lane_multiple)

    def prep_half(wh, bh):
        wh = jnp.pad(wh.T, ((0, Kp - Din), (0, Dp - D))).astype(param_dtype)
        bh = jnp.pad(bh, (0, Dp - D)).astype(jnp.float32).reshape(1, Dp)
        return wh, bh

    w_loc, b_loc = prep_half(w[:D], b[:D])
    w_scale, b_scale = prep_half(w[D:], b[D:])
    return dict(w_loc=w_loc, w_scale=w_scale, b_loc=b_loc, b_scale=b_scale,
                din=Din, d=D)


def normal_param_wrapper(x, params, *, tm=256, tn=512, tk=512,
                         out_dtype=None, vmem_limit_bytes=48 * 1024 * 1024):
    """JAX/Pallas equivalent of NormalParamWrapper(nn.Linear(Din, 2*D)).

    x      : (..., Din) activations
    params : dict from prepare_params()
    returns (loc, scale), each (..., D)
    """
    w_loc, w_scale = params["w_loc"], params["w_scale"]
    b_loc, b_scale = params["b_loc"], params["b_scale"]
    Din, D = params["din"], params["d"]
    if out_dtype is None:
        out_dtype = x.dtype

    assert x.shape[-1] == Din, "input feature size mismatch"
    lead = x.shape[:-1]
    x2 = x.reshape(-1, Din)
    B = x2.shape[0]

    Kp, Dp = w_loc.shape          # padded in prepare_params (multiples of 128)

    # --- tile selection (multiples of the native (8, 128) vreg layout) -------
    tm = min(tm, _round_up(B, 8))
    if tm >= 128:
        tm = (tm // 128) * 128    # clean MXU-pass multiples for big batches
    Bp = _round_up(B, tm)
    tn = _pick_tile(tn, Dp, 128)
    # v7x has 2 TensorCores: if the batch axis yields a single parallel tile,
    # split the N axis so both cores get work (no cost on v5e/v6e).
    if Bp // tm == 1 and Dp // tn < 2 and Dp >= 256:
        tn = _pick_tile(max(128, Dp // 2), Dp, 128)
    tk = _pick_tile(tk, Kp, 128)

    # Only the (small) activation is padded / cast in the hot path; the weight
    # halves and biases were padded + cast once in prepare_params().
    x2 = x2.astype(w_loc.dtype)
    if (Bp, Kp) != x2.shape:
        x2 = jnp.pad(x2, ((0, Bp - B), (0, Kp - Din)))

    grid = (Bp // tm, Dp // tn, Kp // tk)
    n_k = grid[2]

    in_specs = [
        pl.BlockSpec((tm, tk), lambda i, j, k: (i, k)),   # x
        pl.BlockSpec((tk, tn), lambda i, j, k: (k, j)),   # W_loc
        pl.BlockSpec((tk, tn), lambda i, j, k: (k, j)),   # W_scale
        pl.BlockSpec((1, tn), lambda i, j, k: (0, j)),    # b_loc
        pl.BlockSpec((1, tn), lambda i, j, k: (0, j)),    # b_scale
    ]
    out_specs = [
        pl.BlockSpec((tm, tn), lambda i, j, k: (i, j)),   # loc
        pl.BlockSpec((tm, tn), lambda i, j, k: (i, j)),   # scale
    ]
    out_shape = [jax.ShapeDtypeStruct((Bp, Dp), out_dtype),
                 jax.ShapeDtypeStruct((Bp, Dp), out_dtype)]

    if n_k == 1:
        kernel = _kernel_single_k
        scratch_shapes = []
    else:
        kernel = functools.partial(_kernel_multi_k, n_k=n_k)
        scratch_shapes = [pltpu.VMEM((tm, tn), jnp.float32),
                          pltpu.VMEM((tm, tn), jnp.float32)]

    out_itemsize = jnp.dtype(out_dtype).itemsize
    bytes_accessed = (Bp * Kp * x2.dtype.itemsize
                      + 2 * Kp * Dp * w_loc.dtype.itemsize
                      + 2 * Dp * 4
                      + 2 * Bp * Dp * out_itemsize)

    loc_p, scale_p = pl.pallas_call(
        kernel,
        out_shape=out_shape,
        grid_spec=pltpu.PrefetchScalarGridSpec(
            num_scalar_prefetch=0,
            grid=grid,
            in_specs=in_specs,
            out_specs=out_specs,
            scratch_shapes=scratch_shapes,
        ),
        compiler_params=pltpu.CompilerParams(
            dimension_semantics=("parallel", "parallel", "arbitrary"),
            vmem_limit_bytes=vmem_limit_bytes,
        ),
        cost_estimate=pl.CostEstimate(
            flops=2 * Bp * Kp * (2 * Dp),
            transcendentals=2 * Bp * Dp,          # exp + log1p on the scale half only
            bytes_accessed=bytes_accessed,
        ),
    )(x2, w_loc, w_scale, b_loc, b_scale)

    if (Bp, Dp) != (B, D):                        # prefix (offset-0) slices only
        loc_p, scale_p = loc_p[:B, :D], scale_p[:B, :D]
    return loc_p.reshape(*lead, D), scale_p.reshape(*lead, D)


# --------------------------- reference & test ---------------------------------
def _reference(x, params):
    """Plain-JAX reference using the same (bf16-rounded) parameters."""
    Din, D = params["din"], params["d"]
    wl = params["w_loc"][:Din, :D].astype(jnp.float32)
    ws = params["w_scale"][:Din, :D].astype(jnp.float32)
    bl = params["b_loc"][0, :D]
    bs = params["b_scale"][0, :D]
    lead = x.shape[:-1]
    xf = x.reshape(-1, Din).astype(params["w_loc"].dtype).astype(jnp.float32)
    loc = xf @ wl + bl
    scale = _biased_softplus(xf @ ws + bs)
    return loc.reshape(*lead, D), scale.reshape(*lead, D)


if __name__ == "__main__":
    key = jax.random.PRNGKey(0)

    def run_case(k, batch_shape, Din, Dout):
        kx, kw, kb = jax.random.split(k, 3)
        bound = 1.0 / math.sqrt(Din)
        weight = jax.random.uniform(kw, (Dout, Din), jnp.float32, -bound, bound)
        bias = jax.random.uniform(kb, (Dout,), jnp.float32, -bound, bound)
        x = jax.random.normal(kx, (*batch_shape, Din), jnp.float32)

        params = prepare_params(weight, bias)     # one-time split/pad/bf16 cast
        loc, scale = normal_param_wrapper(x, params)
        jax.block_until_ready((loc, scale))

        D = Dout // 2
        loc_ref, scale_ref = _reference(x, params)
        assert loc.shape == (*batch_shape, D) and scale.shape == (*batch_shape, D)
        assert bool(jnp.all(scale > 0.0))
        assert bool(jnp.allclose(loc, loc_ref, atol=1e-4, rtol=1e-4))
        assert bool(jnp.allclose(scale, scale_ref, atol=1e-4, rtol=1e-4))

    k1, k2, k3 = jax.random.split(key, 3)
    # Small policy-head case (single-K fast path): Linear(32 -> 64), D = 32.
    run_case(k1, (8,), Din=32, Dout=64)
    # K-reduction path (5 K steps) with a 128-lane output half.
    run_case(k2, (16,), Din=640, Dout=128)
    # 1-D input like the torchrl docstring example (vector in, vector out).
    run_case(k3, (), Din=32, Dout=64)

    # TODO(synk): the "others" passthrough for multi-output operators (e.g. LSTM)
    # is outside the kernel; only the Linear -> (loc, scale) path is implemented.
    print("KERNEL_OK")
</pallas_src>

<mosaic_0001>
module attributes {stable_mosaic.version = 11 : i64} {
  func.func @_kernel_single_k(%arg0: i32, %arg1: i32, %arg2: i32, %arg3: memref<8x128xbf16, #tpu.memory_space<vmem>>, %arg4: memref<128x128xbf16, #tpu.memory_space<vmem>>, %arg5: memref<128x128xbf16, #tpu.memory_space<vmem>>, %arg6: memref<1x128xf32, #tpu.memory_space<vmem>>, %arg7: memref<1x128xf32, #tpu.memory_space<vmem>>, %arg8: memref<8x128xf32, #tpu.memory_space<vmem>>, %arg9: memref<8x128xf32, #tpu.memory_space<vmem>>) attributes {dimension_semantics = [#tpu.dimension_semantics<parallel>, #tpu.dimension_semantics<parallel>, #tpu.dimension_semantics<arbitrary>], iteration_bounds = array<i64: 1, 1, 1>, scalar_prefetch = 0 : i64, scratch_operands = 0 : i64, tpu.core_type = #tpu.core_type<tc>, window_params = [{transform_indices = @transform_0, window_bounds = array<i64: 8, 128>}, {transform_indices = @transform_1, window_bounds = array<i64: 128, 128>}, {transform_indices = @transform_2, window_bounds = array<i64: 128, 128>}, {transform_indices = @transform_3, window_bounds = array<i64: 1, 128>}, {transform_indices = @transform_4, window_bounds = array<i64: 1, 128>}, {transform_indices = @transform_5, window_bounds = array<i64: 8, 128>}, {transform_indices = @transform_6, window_bounds = array<i64: 8, 128>}]} {
    %c0 = arith.constant 0 : index
    %c0_0 = arith.constant 0 : index
    %0 = vector.load %arg3[%c0, %c0_0] : memref<8x128xbf16, #tpu.memory_space<vmem>>, vector<8x128xbf16>
    %c0_1 = arith.constant 0 : index
    %c0_2 = arith.constant 0 : index
    %1 = vector.load %arg4[%c0_1, %c0_2] : memref<128x128xbf16, #tpu.memory_space<vmem>>, vector<128x128xbf16>
    %cst = arith.constant dense<0.000000e+00> : vector<8x128xf32>
    %2 = tpu.matmul %0, %1, %cst {dimension_numbers = #tpu.dot_dimension_numbers<[1], [0], [0], [1], [0, 0, 1, 1], [], []>} : vector<8x128xbf16>, vector<128x128xbf16>, vector<8x128xf32> -> vector<8x128xf32>
    %c0_3 = arith.constant 0 : index
    %c0_4 = arith.constant 0 : index
    %3 = vector.load %arg6[%c0_3, %c0_4] : memref<1x128xf32, #tpu.memory_space<vmem>>, vector<1x128xf32>
    %4 = vector.broadcast %3 : vector<1x128xf32> to vector<8x128xf32>
    %5 = arith.addf %2, %4 : vector<8x128xf32>
    %c0_5 = arith.constant 0 : index
    %c0_6 = arith.constant 0 : index
    %6 = vector.load %arg5[%c0_5, %c0_6] : memref<128x128xbf16, #tpu.memory_space<vmem>>, vector<128x128xbf16>
    %cst_7 = arith.constant dense<0.000000e+00> : vector<8x128xf32>
    %7 = tpu.matmul %0, %6, %cst_7 {dimension_numbers = #tpu.dot_dimension_numbers<[1], [0], [0], [1], [0, 0, 1, 1], [], []>} : vector<8x128xbf16>, vector<128x128xbf16>, vector<8x128xf32> -> vector<8x128xf32>
    %c0_8 = arith.constant 0 : index
    %c0_9 = arith.constant 0 : index
    %8 = vector.load %arg7[%c0_8, %c0_9] : memref<1x128xf32, #tpu.memory_space<vmem>>, vector<1x128xf32>
    %9 = vector.broadcast %8 : vector<1x128xf32> to vector<8x128xf32>
    %10 = arith.addf %7, %9 : vector<8x128xf32>
    %c0_10 = arith.constant 0 : index
    %c0_11 = arith.constant 0 : index
    %11 = vector.load %arg8[%c0_10, %c0_11] : memref<8x128xf32, #tpu.memory_space<vmem>>, vector<8x128xf32>
    tpu.vector_store %arg8[%c0_10, %c0_11], %5 {strides = array<i32>} : memref<8x128xf32, #tpu.memory_space<vmem>>, vector<8x128xf32>,
    %cst_12 = arith.constant 0.37816456 : f32
    %12 = vector.broadcast %cst_12 : f32 to vector<8x128xf32>
    %13 = arith.addf %10, %12 : vector<8x128xf32>
    %cst_13 = arith.constant 0.000000e+00 : f32
    %14 = vector.broadcast %cst_13 : f32 to vector<8x128xf32>
    %15 = arith.maximumf %13, %14 : vector<8x128xf32>
    %16 = math.absf %13 : vector<8x128xf32>
    %cst_14 = arith.constant 0.000000e+00 : f32
    %17 = vector.broadcast %cst_14 : f32 to vector<8x128xf32>
    %18 = arith.subf %17, %16 : vector<8x128xf32>
    %19 = math.exp %18 : vector<8x128xf32>
    %20 = math.log1p %19 : vector<8x128xf32>
    %21 = arith.addf %15, %20 : vector<8x128xf32>
    %cst_15 = arith.constant 1.000000e-01 : f32
    %22 = vector.broadcast %cst_15 : f32 to vector<8x128xf32>
    %23 = arith.addf %21, %22 : vector<8x128xf32>
    %cst_16 = arith.constant 9.99999974E-5 : f32
    %24 = vector.broadcast %cst_16 : f32 to vector<8x128xf32>
    %25 = arith.maximumf %23, %24 : vector<8x128xf32>
    %c0_17 = arith.constant 0 : index
    %c0_18 = arith.constant 0 : index
    %26 = vector.load %arg9[%c0_17, %c0_18] : memref<8x128xf32, #tpu.memory_space<vmem>>, vector<8x128xf32>
    tpu.vector_store %arg9[%c0_17, %c0_18], %25 {strides = array<i32>} : memref<8x128xf32, #tpu.memory_space<vmem>>, vector<8x128xf32>,
    return
  }
  func.func @transform_0(%arg0: i32, %arg1: i32, %arg2: i32) -> (i32, i32) {
    %c0_i32 = arith.constant 0 : i32
    return %arg0, %arg2 : i32, i32
  }
  func.func @transform_1(%arg0: i32, %arg1: i32, %arg2: i32) -> (i32, i32) {
    %c0_i32 = arith.constant 0 : i32
    return %arg2, %arg1 : i32, i32
  }
  func.func @transform_2(%arg0: i32, %arg1: i32, %arg2: i32) -> (i32, i32) {
    %c0_i32 = arith.constant 0 : i32
    return %arg2, %arg1 : i32, i32
  }
  func.func @transform_3(%arg0: i32, %arg1: i32, %arg2: i32) -> (i32, i32) {
    %c0_i32 = arith.constant 0 : i32
    %c0_i32_0 = arith.constant 0 : i32
    return %c0_i32, %arg1 : i32, i32
  }
  func.func @transform_4(%arg0: i32, %arg1: i32, %arg2: i32) -> (i32, i32) {
    %c0_i32 = arith.constant 0 : i32
    %c0_i32_0 = arith.constant 0 : i32
    return %c0_i32, %arg1 : i32, i32
  }
  func.func @transform_5(%arg0: i32, %arg1: i32, %arg2: i32) -> (i32, i32) {
    %c0_i32 = arith.constant 0 : i32
    return %arg0, %arg1 : i32, i32
  }
  func.func @transform_6(%arg0: i32, %arg1: i32, %arg2: i32) -> (i32, i32) {
    %c0_i32 = arith.constant 0 : i32
    return %arg0, %arg1 : i32, i32
  }
}

</mosaic_0001>

<bundles_post_ra>
// kernel: tpu_custom_call.1
= control target key start
LH: loop header
LB: loop body
LE: loop exit
PB: predicated region body
PF: predicated region fallthrough
CT: control target
= control target key end

     0   :  { %12 = vsyncpa [#allocation3], 0  ;;  %s676_s0 = inlined_call_operand.hbm [shape: bf16[8,128], index: 0, kind: input, shape index: {}]   ;;  %s677_s1 = inlined_call_operand.hbm [shape: bf16[128,128], index: 1, kind: input, shape index: {}]   ;;  %s678_s2 = inlined_call_operand.hbm [shape: bf16[128,128], index: 2, kind: input, shape index: {}]   ;;  %s679_s3 = inlined_call_operand.vmem [shape: f32[1,128], index: 3, kind: input, shape index: {}]   ;;  %s680_s4 = inlined_call_operand.vmem [shape: f32[1,128], index: 4, kind: input, shape index: {}]   ;;  %s681_s5 = inlined_call_operand.hbm [shape: f32[8,128], index: 5, kind: output, shape index: {0}]   ;;  %s682_s6 = inlined_call_operand.hbm [shape: f32[8,128], index: 6, kind: output, shape index: {1}]  }
   0x1   :  { %13 = vsyncpa [#allocation6], 0 }
   0x2   :  { %14 = vsyncpa [#allocation4], 0 }
   0x3   :  { %15 = vsyncpa [#allocation10], 0  ;;  %s560_s21 = smov [#allocation5]   ;;  %s442_s25 = scalar_lea.hbm %s677_s1, 1024 }
   0x4   :  { %s31_s22 = sshll.u32 %s560_s21, 4  ;;  %p443_p0 = scmp.ne.s32.totalorder %s677_s1, %s442_s25  ;;  %s32_s22 = int_to_ptr.vmem [resolvable:$true] %s31_s22 }
   0x5   :  { %p446_p1 = scmp.lt.u32.totalorder %s442_s25, %s677_s1 }
   0x7   :  { %p448_p2 = pnand %p446_p1, %p443_p0 }
   0x9   :  { %451 = shalt.err (!%p448_p2)
}
   0xa   :  { %s452_s30 = scalar_lea.vmem %s32_s22, 1024  ;;  %p457_p4 = scmp.lt.s32.totalorder %s32_s22, %s32_s22 }
   0xb   :  { %p453_p3 = scmp.ne.s32.totalorder %s32_s22, %s452_s30  ;;  %p458_p5 = scmp.lt.s32.totalorder %s452_s30, %s452_s30 }
   0xd   :  { %p459_p6 = por %p458_p5, %p457_p4 }
   0xf   :  { %p460_p7 = pnand %p459_p6, %p453_p3 }
  0x11   :  { %463 = shalt.err (!%p460_p7)
}
  0x12   :  { %s561_s7 = smov 64   ;;  %s562_s8 = smov 4  }
  0x13   :  { %37 = dma.hbm_to_vmem [thread:$0]  %s677_s1, 1024, %s32_s22, [#allocation6], %s561_s7, %s561_s7, %s562_s8  }
  0x14   :  { %s563_s11 = smov [#allocation2]   ;;  %s564_s13 = smov [#allocation7]  }
  0x15   :  { %s22_s12 = sshll.u32 %s563_s11, 4  ;;  %s43_s14 = sshll.u32 %s564_s13, 4  ;;  %s23_s12 = int_to_ptr.vmem [resolvable:$true] %s22_s12  ;;  %s44_s14 = int_to_ptr.vmem [resolvable:$true] %s43_s14 }
  0x16   :  { %s464_s17 = scalar_lea.hbm %s676_s0, 64 }
  0x17   :  { %p465_p8 = scmp.ne.s32.totalorder %s676_s0, %s464_s17  ;;  %p468_p9 = scmp.lt.u32.totalorder %s464_s17, %s676_s0 }
  0x19   :  { %p470_p10 = pnand %p468_p9, %p465_p8 }
  0x1b   :  { %473 = shalt.err (!%p470_p10)
}
  0x1c   :  { %s474_s1 = scalar_lea.vmem %s23_s12, 64  ;;  %p479_p12 = scmp.lt.s32.totalorder %s23_s12, %s23_s12 }
  0x1d   :  { %p475_p11 = scmp.ne.s32.totalorder %s23_s12, %s474_s1  ;;  %p480_p13 = scmp.lt.s32.totalorder %s474_s1, %s474_s1 }
  0x1f   :  { %p481_p0 = por %p480_p13, %p479_p12 }
  0x21   :  { %p482_p1 = pnand %p481_p0, %p475_p11 }
  0x23   :  { %485 = shalt.err (!%p482_p1)
}
  0x24   :  { %25 = dma.hbm_to_vmem [thread:$0]  %s676_s0, 64, %s23_s12, [#allocation3]  }
  0x25   :  { %s486_s26 = scalar_lea.hbm %s678_s2, 1024 }
  0x26   :  { %p487_p2 = scmp.ne.s32.totalorder %s678_s2, %s486_s26  ;;  %p490_p3 = scmp.lt.u32.totalorder %s486_s26, %s678_s2 }
  0x28   :  { %p492_p4 = pnand %p490_p3, %p487_p2 }
  0x2a   :  { %495 = shalt.err (!%p492_p4)
}
  0x2b   :  { %s496_s9 = scalar_lea.vmem %s44_s14, 1024  ;;  %p501_p6 = scmp.lt.s32.totalorder %s44_s14, %s44_s14 }
  0x2c   :  { %p497_p5 = scmp.ne.s32.totalorder %s44_s14, %s496_s9  ;;  %p502_p7 = scmp.lt.s32.totalorder %s496_s9, %s496_s9 }
  0x2e   :  { %p503_p8 = por %p502_p7, %p501_p6 }
  0x30   :  { %p504_p9 = pnand %p503_p8, %p497_p5 }
  0x32   :  { %507 = shalt.err (!%p504_p9)
}
  0x33   :  { %49 = dma.hbm_to_vmem [thread:$0]  %s678_s2, 1024, %s44_s14, [#allocation6], %s561_s7, %s561_s7, %s562_s8  }
  0x34   :  { %552 = dma.done.wait [#allocation3], 64  }
  0x35   :  { %553 = vsyncadd [#allocation3], 4294967232 }
  0x36   :  { %554 = dma.done.wait [#allocation6], 2048  }
  0x37   :  { %555 = vsyncadd [#allocation6], 4294965248  ;;  %v565_v0 = vmov 0.0   ;;  %vm566_vm0 = vmmov 0   ;;  %v422_v1 = vld [vmem:[#allocation7] sm:$0xff]   ;;  %v423_v2 = vld [vmem:[#allocation7 + $0x8] sm:$0xff]  }
  0x38   :  { %393 = vmatprep.subr.bf16.mxu1 %v565_v0  ;;  %409 = vmatprep.mubr.msk.bf16.mxu1 %vm566_vm0, %v565_v0  ;;  %v424_v3 = vld [vmem:[#allocation7 + $0x10] sm:$0xff]   ;;  %v430_v4 = vld [vmem:[#allocation5] sm:$0xff]   ;;  %v425_v5 = vld [vmem:[#allocation7 + $0x18] sm:$0xff]   ;;  %s567_s12 = smov [#allocation8]  }
  0x39   :  { %373 = vmatprep.subr.bf16.mxu0 %v565_v0  ;;  %389 = vmatprep.mubr.msk.bf16.mxu0 %vm566_vm0, %v565_v0  ;;  %v431_v6 = vld [vmem:[#allocation5 + $0x8] sm:$0xff]   ;;  %v426_v7 = vld [vmem:[#allocation7 + $0x20] sm:$0xff]   ;;  %v432_v8 = vld [vmem:[#allocation5 + $0x10] sm:$0xff]   ;;  %s313_s13 = sshll.u32 %s567_s12, 4  ;;  %s314_s13 = int_to_ptr.vmem [resolvable:$true] %s313_s13 }
  0x3a   :  { %394 = vmatpush3.bf16.msra.mxu1 %v422_v1  ;;  %374 = vmatpush3.bf16.msra.mxu0 %v430_v4  ;;  %v427_v9 = vld [vmem:[#allocation7 + $0x28] sm:$0xff]   ;;  %v433_v10 = vld [vmem:[#allocation5 + $0x18] sm:$0xff]   ;;  %v428_v11 = vld [vmem:[#allocation7 + $0x30] sm:$0xff]   ;;  %p513_p11 = scmp.lt.s32.totalorder %s314_s13, %s314_s13 }
  0x3b   :  { %395 = vmatprep.subr.bf16.mxu1 %v565_v0  ;;  %375 = vmatprep.subr.bf16.mxu0 %v565_v0  ;;  %v434_v12 = vld [vmem:[#allocation5 + $0x20] sm:$0xff]   ;;  %v429_v13 = vld [vmem:[#allocation7 + $0x38] sm:$0xff]   ;;  %v435_v14 = vld [vmem:[#allocation5 + $0x28] sm:$0xff]  }
  0x3c   :  { %v64_v15 = vld [vmem:[#allocation2] sm:$0xf]  ;;  %v436_v16 = vld [vmem:[#allocation5 + $0x30] sm:$0xff]  }
  0x3d   :  { %v437_v17 = vld [vmem:[#allocation5 + $0x38] sm:$0xff]  }
  0x3e   :  { %396 = vmatpush3.bf16.msra.mxu1 %v423_v2  ;;  %376 = vmatpush3.bf16.msra.mxu0 %v431_v6  ;;  %v346_v18 = vld [vmem:[%s680_s4] ss:$0 sm:$0xff]  ;;  %s508_s4 = scalar_lea.vmem %s314_s13, 128 }
  0x3f   :  { %397 = vmatprep.subr.bf16.mxu1 %v565_v0  ;;  %377 = vmatprep.subr.bf16.mxu0 %v565_v0  ;;  %v337_v27 = vld [vmem:[%s679_s3] ss:$0 sm:$0xff]  ;;  %p509_p10 = scmp.ne.s32.totalorder %s314_s13, %s508_s4  ;;  %p514_p12 = scmp.lt.s32.totalorder %s508_s4, %s508_s4 }
  0x41   :  { %p515_p13 = por %p514_p12, %p513_p11 }
  0x42   :  { %398 = vmatpush3.bf16.msra.mxu1 %v424_v3  ;;  %378 = vmatpush3.bf16.msra.mxu0 %v432_v8 }
  0x43   :  { %399 = vmatprep.subr.bf16.mxu1 %v565_v0  ;;  %379 = vmatprep.subr.bf16.mxu0 %v565_v0  ;;  %p516_p0 = pnand %p515_p13, %p509_p10 }
  0x46   :  { %400 = vmatpush3.bf16.msra.mxu1 %v425_v5  ;;  %380 = vmatpush3.bf16.msra.mxu0 %v433_v10 }
  0x47   :  { %401 = vmatprep.subr.bf16.mxu1 %v565_v0  ;;  %381 = vmatprep.subr.bf16.mxu0 %v565_v0 }
  0x4a   :  { %402 = vmatpush3.bf16.msra.mxu1 %v426_v7  ;;  %382 = vmatpush3.bf16.msra.mxu0 %v434_v12 }
  0x4b   :  { %403 = vmatprep.subr.bf16.mxu1 %v565_v0  ;;  %383 = vmatprep.subr.bf16.mxu0 %v565_v0 }
  0x4e   :  { %404 = vmatpush3.bf16.msra.mxu1 %v427_v9  ;;  %384 = vmatpush3.bf16.msra.mxu0 %v435_v14 }
  0x4f   :  { %405 = vmatprep.subr.bf16.mxu1 %v565_v0  ;;  %385 = vmatprep.subr.bf16.mxu0 %v565_v0 }
  0x52   :  { %406 = vmatpush3.bf16.msra.mxu1 %v428_v11  ;;  %386 = vmatpush3.bf16.msra.mxu0 %v436_v16 }
  0x53   :  { %407 = vmatprep.subr.bf16.mxu1 %v565_v0  ;;  %387 = vmatprep.subr.bf16.mxu0 %v565_v0 }
  0x56   :  { %408 = vmatpush3.bf16.msra.mxu1 %v429_v13  ;;  %388 = vmatpush3.bf16.msra.mxu0 %v437_v17 }
  0x59   :  { %410 = vmatmul.mubr.bf16.vlgmr.msra.gmra.mrb[0].mxu1 %v64_v15  ;;  %390 = vmatmul.mubr.bf16.vlgmr.msra.gmra.mrb[0].mxu0 %v64_v15 }
 0x12c   :  { %v281_v19 = vpop.f32.mrb[0].mxu1  ;;  %v170_v29 = vpop.f32.mrb[0].mxu0 }
 0x12d   :  { %v282_v20 = vadd.f32 %v346_v18, %v281_v19  ;;  %v411_v21 = vpop.f32.mrb[1].mxu1  ;;  %v171_v30 = vadd.f32 %v337_v27, %v170_v29  ;;  %v391_v31 = vpop.f32.mrb[1].mxu0 }
 0x12e   :  { %v284_v22 = vpop.f32.mrb[2].mxu1  ;;  %v173_v32 = vpop.f32.mrb[2].mxu0 }
 0x12f   :  { %v288_v23 = vadd.f32 0.37816456, %v282_v20  ;;  %v412_v24 = vpop.f32.mrb[3].mxu1  ;;  %287 = vst [vmem:[#allocation8] sm:$0xff] %v171_v30  ;;  %v392_v33 = vpop.f32.mrb[3].mxu0 }
 0x131   :  { %v290_v25 = vand.u32 2147483647, %v288_v23 }
 0x133   :  { %v291_v26 = vsub.f32 0.0, %v290_v25 }
 0x135   :  { %v292_v28 = vmul.f32 1.442695, %v291_v26 }
 0x137   :  { %438 = vpow2.f32 %v292_v28 }
 0x138   :  { %519 = shalt.err (!%p516_p0)
}
 0x139   :  { %s520_s15 = scalar_lea.hbm %s681_s5, 128 }
 0x13a   :  { %p521_p1 = scmp.ne.s32.totalorder %s681_s5, %s520_s15  ;;  %p524_p2 = scmp.lt.u32.totalorder %s520_s15, %s681_s5 }
 0x13c   :  { %p526_p3 = pnand %p524_p2, %p521_p1 }
 0x13e   :  { %529 = shalt.err (!%p526_p3)
}
 0x13f   :  { %316 = dma.vmem_to_hbm [thread:$0]  %s314_s13, 128, %s681_s5, [#allocation4]   ;;  %v289_v42 = vmax.f32 %v288_v23, 0.0 }
 0x140   :  { %s568_s1 = smov [#allocation9]  }
 0x141   :  { %v439_v34 = vpop.eup %438  ;;  %s323_s22 = sshll.u32 %s568_s1, 4  ;;  %s324_s22 = int_to_ptr.vmem [resolvable:$true] %s323_s22 }
 0x142   :  { %v294_v35 = vadd.f32 1.0, %v439_v34  ;;  %v297_v36 = vmul.f32 -0.5, %v439_v34  ;;  %v300_v38 = vand.u32 2147483647, %v439_v34  ;;  %s530_s5 = scalar_lea.vmem %s324_s22, 128  ;;  %p535_p5 = scmp.lt.s32.totalorder %s324_s22, %s324_s22 }
 0x143   :  { %p531_p4 = scmp.ne.s32.totalorder %s324_s22, %s530_s5  ;;  %p536_p6 = scmp.lt.s32.totalorder %s530_s5, %s530_s5 }
 0x144   :  { %440 = vlog2.f32 %v294_v35  ;;  %v298_v37 = vadd.f32 1.0, %v297_v36  ;;  %vm301_vm1 = vcmp.lt.f32.partialorder %v300_v38, 0.0004427343 }
 0x145   :  { %p537_p7 = por %p536_p6, %p535_p5 }
 0x146   :  { %v299_v41 = vmul.f32 %v439_v34, %v298_v37 }
 0x147   :  { %p538_p8 = pnand %p537_p7, %p531_p4 }
 0x14e   :  { %v441_v39 = vpop.eup %440 }
 0x14f   :  { %v296_v40 = vmul.f32 0.6931472, %v441_v39 }
 0x151   :  { %v302_v43 = vsel %vm301_vm1, %v299_v41, %v296_v40 }
 0x152   :  { %v303_v44 = vadd.f32 %v302_v43, %v289_v42 }
 0x154   :  { %v304_v45 = vadd.f32 0.1, %v303_v44 }
 0x156   :  { %v305_v46 = vmax.f32 %v304_v45, 0.0001 }
 0x158   :  { %306 = vst [vmem:[#allocation9] sm:$0xff] %v305_v46 }
 0x159   :  { %541 = shalt.err (!%p538_p8)
}
 0x15a   :  { %s542_s25 = scalar_lea.hbm %s682_s6, 128 }
 0x15b   :  { %p543_p9 = scmp.ne.s32.totalorder %s682_s6, %s542_s25  ;;  %p546_p10 = scmp.lt.u32.totalorder %s542_s25, %s682_s6 }
 0x15d   :  { %p548_p11 = pnand %p546_p10, %p543_p9 }
 0x15f   :  { %551 = shalt.err (!%p548_p11)
}
 0x160   :  { %326 = dma.vmem_to_hbm [thread:$0]  %s324_s22, 128, %s682_s6, [#allocation10]  }
 0x161   :  { %556 = dma.done.wait [#allocation4], 128  }
 0x162   :  { %557 = vsyncadd [#allocation4], 4294967168 }
 0x163   :  { %558 = dma.done.wait [#allocation10], 128  }
 0x164   :  { %559 = vsyncadd [#allocation10], 4294967168 }
 0x165   :  { %333 = vsyncpa [#allocation3], 1 }
 0x166   :  { %334 = vsyncpa [#allocation6], 1 }
 0x167   :  { %335 = vsyncpa [#allocation4], 1 }
 0x168   :  { %336 = vsyncpa [#allocation10], 1 }

</bundles_post_ra>
